<compile_context>
chip_gen: v7x
topology: tpu7x:2x2x1
jax: 0.10.0
libtpu: 0.0.40
codegen_flags: <defaults>
</compile_context>

<pallas_src>
import jax
import jax.numpy as jnp
from jax.experimental import pallas as pl
from jax.experimental.pallas import tpu as pltpu


def _round_up(n, m):
    return ((n + m - 1) // m) * m


def _mlp_kernel(x_ref, w1_ref, b1_ref, w2t_ref, b2_ref, o_ref):
    # fc1 on the MXU (bf16 operands when enabled), f32 accumulation.
    h = jnp.dot(x_ref[...], w1_ref[...], preferred_element_type=jnp.float32)
    # bias + ReLU in f32 on the VPU.
    h = jnp.maximum(h + b1_ref[...], 0.0)                       # (tile_b, H) f32
    # fc2: contract over the hidden axis producing a lane-dense (1, tile_b)
    # tile (batch on the lane axis) -> unmasked stores, MXU is otherwise idle
    # here so the M=1 matmul is free.
    y = jax.lax.dot_general(
        w2t_ref[...], h,                                        # (1,H) . (tile_b,H)^T
        dimension_numbers=(((1,), (1,)), ((), ())),
        preferred_element_type=jnp.float32)                     # (1, tile_b)
    o_ref[...] = (y + b2_ref[0]).astype(o_ref.dtype)


def _select_tile_b(B, F, H, mm_itemsize):
    """Pick the largest batch tile that fits comfortably in scoped VMEM."""
    if B <= 1024:
        # Small problem: one resident tile (rounded up to the sublane size).
        return _round_up(max(B, 1), 8)
    # per-row VMEM bytes: x tile (double buffered) + f32 fc1 activation + out
    per_row = 2 * F * mm_itemsize + H * 4 + 2 * 4
    fixed = 2 * F * H * mm_itemsize + 4 * H * 4                 # W1, b1, W2^T
    budget = 12 * 1024 * 1024                                   # headroom on v5e/v7x
    max_rows = max(128, (budget - fixed) // per_row)
    tile = min(2048, max_rows)
    tile = (tile // 128) * 128                                  # lane-dense output block
    return max(tile, 128)


def recsys_forward(x, w1, b1, w2, b2, *, tile_b=None, use_bf16=True):
    """x: [B, F]; w1: [F, H]; b1: [1, H]; w2: [H, 1]; b2: [1]  ->  [B, 1] f32."""
    B, F = x.shape
    H = w1.shape[1]
    assert w1.shape == (F, H) and b1.shape == (1, H)
    assert w2.shape == (H, 1) and b2.shape == (1,)

    # ---- dtypes: bf16 matmul operands halve HBM traffic on the x stream -------
    mm_dtype = jnp.bfloat16 if use_bf16 else jnp.float32
    itm = jnp.dtype(mm_dtype).itemsize

    # ---- batch tile selection -------------------------------------------------
    if tile_b is None:
        tile_b = _select_tile_b(B, F, H, itm)
    assert tile_b % 8 == 0, "tile_b must be a multiple of 8 (sublane constraint)"

    B_pad = _round_up(B, tile_b)
    num_tiles = B_pad // tile_b
    assert num_tiles == 1 or tile_b % 128 == 0, (
        "multi-step grids need tile_b % 128 == 0 (lane-dense output block)")

    x_in = x.astype(mm_dtype)
    w1_in = w1.astype(mm_dtype)
    b1_in = b1.astype(jnp.float32)
    w2t = w2.astype(jnp.float32).T              # (1, H)
    b2_in = b2.astype(jnp.float32)              # (1,) scalar -> SMEM

    if B_pad != B:
        x_in = jnp.pad(x_in, ((0, B_pad - B), (0, 0)))

    # ---- VMEM budget (double-buffered inputs + f32 fc1 activation) ------------
    vmem_est = (2 * tile_b * F * itm            # x tile (double buffered)
                + 2 * F * H * itm               # W1 (resident, double buffered)
                + 2 * (2 * H * 4)               # b1, W2^T
                + 2 * tile_b * 4                # output tile (double buffered)
                + tile_b * H * 4)               # fc1 activation in f32
    assert vmem_est < 16 * 1024 * 1024, (
        f"tile_b={tile_b} needs ~{vmem_est / 2**20:.1f} MiB VMEM; "
        "choose a smaller tile_b (keeps headroom on v5e/v7x scoped VMEM)")

    out = pl.pallas_call(
        _mlp_kernel,
        out_shape=jax.ShapeDtypeStruct((1, B_pad), jnp.float32),
        grid_spec=pltpu.PrefetchScalarGridSpec(
            num_scalar_prefetch=0,
            grid=(num_tiles,),
            in_specs=[
                pl.BlockSpec((tile_b, F), lambda i: (i, 0)),        # x tile (pipelined)
                pl.BlockSpec((F, H), lambda i: (0, 0)),             # W1 (resident)
                pl.BlockSpec((1, H), lambda i: (0, 0)),             # b1 (resident)
                pl.BlockSpec((1, H), lambda i: (0, 0)),             # W2^T (resident)
                pl.BlockSpec(memory_space=pltpu.MemorySpace.SMEM),  # b2 scalar
            ],
            out_specs=pl.BlockSpec((1, tile_b), lambda i: (0, i)),  # lane-dense out
        ),
        compiler_params=pltpu.CompilerParams(
            dimension_semantics=("parallel",)),
    )(x_in, w1_in, b1_in, w2t, b2_in)

    return out.reshape(B_pad, 1)[:B]


def init_params(key, num_features, hidden_size=128, dtype=jnp.float32):
    """Mimics PyTorch nn.Linear default init (U[-1/sqrt(fan_in), 1/sqrt(fan_in)])."""
    k1, k2, k3, k4 = jax.random.split(key, 4)
    bound1 = 1.0 / jnp.sqrt(num_features)
    bound2 = 1.0 / jnp.sqrt(hidden_size)
    w1 = jax.random.uniform(k1, (num_features, hidden_size), dtype, -bound1, bound1)
    b1 = jax.random.uniform(k2, (1, hidden_size), dtype, -bound1, bound1)
    w2 = jax.random.uniform(k3, (hidden_size, 1), dtype, -bound2, bound2)
    b2 = jax.random.uniform(k4, (1,), dtype, -bound2, bound2)
    return w1, b1, w2, b2


def _reference(x, w1, b1, w2, b2):
    h = jnp.maximum(
        jnp.dot(x, w1, precision=jax.lax.Precision.HIGHEST) + b1, 0.0)
    return jnp.sum(h * w2.T, axis=-1, keepdims=True) + b2


if __name__ == "__main__":
    num_features = 32
    hidden_size = 128

    key = jax.random.PRNGKey(0)
    kx, kp, kx2 = jax.random.split(key, 3)
    w1, b1, w2, b2 = init_params(kp, num_features, hidden_size)

    # ---- small batch: single-tile path ----------------------------------------
    batch = 8
    x = jax.random.normal(kx, (batch, num_features), dtype=jnp.float32)
    ref = _reference(x, w1, b1, w2, b2)

    # 1) exact-semantics path (f32 operands) -- tight check.
    out_f32 = jax.block_until_ready(recsys_forward(x, w1, b1, w2, b2, use_bf16=False))
    assert out_f32.shape == (batch, 1)
    assert jnp.allclose(out_f32, ref, atol=1e-4, rtol=1e-4), "f32 path mismatch"

    # 2) default perf path (bf16 matmul operands, f32 accumulation).
    out = jax.block_until_ready(recsys_forward(x, w1, b1, w2, b2))
    assert out.shape == (batch, 1)
    assert jnp.allclose(out, ref, atol=2e-2, rtol=2e-2), "bf16 path mismatch"

    # ---- ragged batch: multi-tile + padding path -------------------------------
    batch2 = 300
    x2 = jax.random.normal(kx2, (batch2, num_features), dtype=jnp.float32)
    ref2 = _reference(x2, w1, b1, w2, b2)
    out2 = jax.block_until_ready(
        recsys_forward(x2, w1, b1, w2, b2, tile_b=128, use_bf16=False))
    assert out2.shape == (batch2, 1)
    assert jnp.allclose(out2, ref2, atol=1e-4, rtol=1e-4), "multi-tile path mismatch"

    print("KERNEL_OK")
</pallas_src>

<mosaic_0001>
module attributes {stable_mosaic.version = 11 : i64} {
  func.func @_mlp_kernel(%arg0: i32, %arg1: memref<8x32xf32, #tpu.memory_space<vmem>>, %arg2: memref<32x128xf32, #tpu.memory_space<vmem>>, %arg3: memref<1x128xf32, #tpu.memory_space<vmem>>, %arg4: memref<1x128xf32, #tpu.memory_space<vmem>>, %arg5: memref<1xf32, #tpu.memory_space<smem>>, %arg6: memref<1x8xf32, #tpu.memory_space<vmem>>) attributes {dimension_semantics = [#tpu.dimension_semantics<parallel>], iteration_bounds = array<i64: 1>, scalar_prefetch = 0 : i64, scratch_operands = 0 : i64, tpu.core_type = #tpu.core_type<tc>, window_params = [{transform_indices = @transform_0, window_bounds = array<i64: 8, 32>}, {pipeline_mode = #tpu.pipeline_mode<synchronous>, transform_indices = @transform_1, window_bounds = array<i64: 32, 128>}, {pipeline_mode = #tpu.pipeline_mode<synchronous>, transform_indices = @transform_2, window_bounds = array<i64: 1, 128>}, {pipeline_mode = #tpu.pipeline_mode<synchronous>, transform_indices = @transform_3, window_bounds = array<i64: 1, 128>}, {transform_indices = @transform_4, window_bounds = array<i64: 1>}, {transform_indices = @transform_5, window_bounds = array<i64: 1, 8>}]} {
    %c0 = arith.constant 0 : index
    %c0_0 = arith.constant 0 : index
    %0 = vector.load %arg1[%c0, %c0_0] : memref<8x32xf32, #tpu.memory_space<vmem>>, vector<8x32xf32>
    %c0_1 = arith.constant 0 : index
    %c0_2 = arith.constant 0 : index
    %1 = vector.load %arg2[%c0_1, %c0_2] : memref<32x128xf32, #tpu.memory_space<vmem>>, vector<32x128xf32>
    %cst = arith.constant dense<0.000000e+00> : vector<8x128xf32>
    %2 = tpu.matmul %0, %1, %cst {dimension_numbers = #tpu.dot_dimension_numbers<[1], [0], [0], [1], [0, 0, 1, 1], [], []>} : vector<8x32xf32>, vector<32x128xf32>, vector<8x128xf32> -> vector<8x128xf32>
    %c0_3 = arith.constant 0 : index
    %c0_4 = arith.constant 0 : index
    %3 = vector.load %arg3[%c0_3, %c0_4] : memref<1x128xf32, #tpu.memory_space<vmem>>, vector<1x128xf32>
    %4 = vector.broadcast %3 : vector<1x128xf32> to vector<8x128xf32>
    %5 = arith.addf %2, %4 : vector<8x128xf32>
    %cst_5 = arith.constant 0.000000e+00 : f32
    %6 = vector.broadcast %cst_5 : f32 to vector<8x128xf32>
    %7 = arith.maximumf %5, %6 : vector<8x128xf32>
    %c0_6 = arith.constant 0 : index
    %c0_7 = arith.constant 0 : index
    %8 = vector.load %arg4[%c0_6, %c0_7] : memref<1x128xf32, #tpu.memory_space<vmem>>, vector<1x128xf32>
    %cst_8 = arith.constant dense<0.000000e+00> : vector<1x8xf32>
    %9 = tpu.matmul %8, %7, %cst_8 {dimension_numbers = #tpu.dot_dimension_numbers<[1], [1], [0], [0], [0, 0, 1, 0], [], []>} : vector<1x128xf32>, vector<8x128xf32>, vector<1x8xf32> -> vector<1x8xf32>
    %c0_9 = arith.constant 0 : index
    %10 = memref.load %arg5[%c0_9] : memref<1xf32, #tpu.memory_space<smem>>
    %11 = vector.broadcast %10 : f32 to vector<1x8xf32>
    %12 = arith.addf %9, %11 : vector<1x8xf32>
    %c0_10 = arith.constant 0 : index
    %c0_11 = arith.constant 0 : index
    %13 = vector.load %arg6[%c0_10, %c0_11] : memref<1x8xf32, #tpu.memory_space<vmem>>, vector<1x8xf32>
    tpu.vector_store %arg6[%c0_10, %c0_11], %12 {strides = array<i32>} : memref<1x8xf32, #tpu.memory_space<vmem>>, vector<1x8xf32>,
    return
  }
  func.func @transform_0(%arg0: i32) -> (i32, i32) {
    %c0_i32 = arith.constant 0 : i32
    %c0_i32_0 = arith.constant 0 : i32
    return %arg0, %c0_i32 : i32, i32
  }
  func.func @transform_1(%arg0: i32) -> (i32, i32) {
    %c0_i32 = arith.constant 0 : i32
    %c0_i32_0 = arith.constant 0 : i32
    %c0_i32_1 = arith.constant 0 : i32
    return %c0_i32, %c0_i32_0 : i32, i32
  }
  func.func @transform_2(%arg0: i32) -> (i32, i32) {
    %c0_i32 = arith.constant 0 : i32
    %c0_i32_0 = arith.constant 0 : i32
    %c0_i32_1 = arith.constant 0 : i32
    return %c0_i32, %c0_i32_0 : i32, i32
  }
  func.func @transform_3(%arg0: i32) -> (i32, i32) {
    %c0_i32 = arith.constant 0 : i32
    %c0_i32_0 = arith.constant 0 : i32
    %c0_i32_1 = arith.constant 0 : i32
    return %c0_i32, %c0_i32_0 : i32, i32
  }
  func.func @transform_4(%arg0: i32) -> i32 {
    %c0_i32 = arith.constant 0 : i32
    %c0_i32_0 = arith.constant 0 : i32
    return %c0_i32 : i32
  }
  func.func @transform_5(%arg0: i32) -> (i32, i32) {
    %c0_i32 = arith.constant 0 : i32
    %c0_i32_0 = arith.constant 0 : i32
    return %c0_i32, %arg0 : i32, i32
  }
}

</mosaic_0001>

<bundles_post_ra>
// kernel: tpu_custom_call.1
= control target key start
LH: loop header
LB: loop body
LE: loop exit
PB: predicated region body
PF: predicated region fallthrough
CT: control target
= control target key end

     0   :  { %11 = vsyncpa [#allocation4], 0  ;;  %s427_s0 = inlined_call_operand.hbm [shape: f32[8,32], index: 0, kind: input, shape index: {}]   ;;  %s428_s1 = inlined_call_operand.hbm [shape: f32[32,128], index: 1, kind: input, shape index: {}]   ;;  %s429_s2 = inlined_call_operand.vmem [shape: f32[1,128], index: 2, kind: input, shape index: {}]   ;;  %s430_s3 = inlined_call_operand.vmem [shape: f32[1,128], index: 3, kind: input, shape index: {}]   ;;  %s431_s4 = inlined_call_operand.<no memory space> [shape: f32[1], index: 4, kind: input, shape index: {}]   ;;  %s432_s5 = inlined_call_operand.hbm [shape: f32[1,8], index: 5, kind: output, shape index: {}]  }
   0x1   :  { %12 = vsyncpa [#allocation7], 0 }
   0x2   :  { %13 = vsyncpa [#allocation5], 0  ;;  %s337_s18 = smov [#allocation3]   ;;  %s338_s20 = smov [#allocation6]  }
   0x3   :  { %s20_s19 = sshll.u32 %s337_s18, 4  ;;  %s29_s21 = sshll.u32 %s338_s20, 4  ;;  %s21_s19 = int_to_ptr.vmem [resolvable:$true] %s20_s19  ;;  %s375_s21 = int_to_ptr.vmem [resolvable:$true] %s29_s21 }
   0x4   :  { %s265_s24 = scalar_lea.hbm %s427_s0, 128 }
   0x5   :  { %p266_p0 = scmp.ne.s32.totalorder %s427_s0, %s265_s24  ;;  %p269_p1 = scmp.lt.u32.totalorder %s265_s24, %s427_s0 }
   0x7   :  { %p271_p2 = pnand %p269_p1, %p266_p0 }
   0x9   :  { %274 = shalt.err (!%p271_p2)
}
   0xa   :  { %s275_s29 = scalar_lea.vmem %s21_s19, 128  ;;  %p280_p4 = scmp.lt.s32.totalorder %s21_s19, %s21_s19 }
   0xb   :  { %p276_p3 = scmp.ne.s32.totalorder %s21_s19, %s275_s29  ;;  %p281_p5 = scmp.lt.s32.totalorder %s275_s29, %s275_s29 }
   0xd   :  { %p282_p6 = por %p281_p5, %p280_p4 }
   0xf   :  { %p283_p7 = pnand %p282_p6, %p276_p3 }
  0x11   :  { %286 = shalt.err (!%p283_p7)
}
  0x12   :  { %23 = dma.hbm_to_vmem [thread:$0]  %s427_s0, 128, %s21_s19, [#allocation4]  }
  0x13   :  { %s287_s9 = scalar_lea.hbm %s428_s1, 512 }
  0x14   :  { %p288_p8 = scmp.ne.s32.totalorder %s428_s1, %s287_s9  ;;  %p291_p9 = scmp.lt.u32.totalorder %s287_s9, %s428_s1 }
  0x16   :  { %p293_p10 = pnand %p291_p9, %p288_p8 }
  0x18   :  { %296 = shalt.err (!%p293_p10)
}
  0x19   :  { %s297_s14 = scalar_lea.vmem %s375_s21, 512  ;;  %p302_p12 = scmp.lt.s32.totalorder %s375_s21, %s375_s21 }
  0x1a   :  { %p298_p11 = scmp.ne.s32.totalorder %s375_s21, %s297_s14  ;;  %p303_p13 = scmp.lt.s32.totalorder %s297_s14, %s297_s14 }
  0x1c   :  { %p304_p0 = por %p303_p13, %p302_p12 }
  0x1e   :  { %p305_p1 = pnand %p304_p0, %p298_p11 }
  0x20   :  { %308 = shalt.err (!%p305_p1)
}
  0x21   :  { %s339_s0 = smov 128   ;;  %s340_s15 = smov 8  }
  0x22   :  { %35 = dma.hbm_to_vmem [thread:$0]  %s428_s1, 512, %s375_s21, [#allocation7], %s339_s0, %s339_s0, %s340_s15  }
  0x23   :  { %331 = dma.done.wait [#allocation4], 128  }
  0x24   :  { %332 = vsyncadd [#allocation4], 4294967168 }
  0x25   :  { %333 = dma.done.wait [#allocation7], 512  }
  0x26   :  { %334 = vsyncadd [#allocation7], 4294966784  ;;  %v341_v0 = vmov 0.0|0.0   ;;  %vm342_vm0 = vmmov 0   ;;  %v343_v1 = vmov 0.0   ;;  %v49_v2 = vld [vmem:[#allocation6] sm:$0xff]  ;;  %v137_v15 = vstv %s431_s4 }
  0x27   :  { %251 = vmatprep.subr.bf16.mxu0 %v341_v0  ;;  %243 = vmatprep.mubr.msk.f32.mxu0 %vm342_vm0, %v343_v1  ;;  %v50_v3 = vld [vmem:[#allocation6 + $0x8] sm:$0xff]  ;;  %v51_v4 = vld [vmem:[#allocation6 + $0x10] sm:$0xff]  ;;  %v52_v6 = vld [vmem:[#allocation6 + $0x18] sm:$0xff]  ;;  %vm60_vm1 = vcmask 261120   ;;  %s344_s23 = smov [#allocation8]   ;;  %vm208_vm2 = vcmask 57344  }
  0x28   :  { %246 = vmatprep.subr.mxu1 %v343_v1  ;;  %248 = vmatprep.mubr.msk.f32.mxu1 %vm342_vm0, %v343_v1  ;;  %v252_v5 = vpack.c.bf16 %v50_v3, %v49_v2  ;;  %v255_v7 = vpack.c.bf16 %v52_v6, %v51_v4  ;;  %v48_v8 = vld [vmem:[#allocation3] sm:$0xff]  ;;  %s216_s24 = sshll.u32 %s344_s23, 4  ;;  %s217_s24 = int_to_ptr.vmem [resolvable:$true] %s216_s24 }
  0x29   :  { %v226_v9 = vld [vmem:[%s429_s2] ss:$0 sm:$0xff]  ;;  %s309_s2 = scalar_lea.vmem %s217_s24, 16  ;;  %s313_s25 = scalar_lea.vmem %s217_s24, 32 }
  0x2a   :  { %253 = vmatpush3.bf16.msra.mxu0 %v252_v5  ;;  %v135_v14 = vld [vmem:[%s430_s3] sm:$0x1]  ;;  %p310_p2 = scmp.ne.s32.totalorder %s217_s24, %s309_s2  ;;  %p314_p3 = scmp.lt.s32.totalorder %s217_s24, %s217_s24 }
  0x2b   :  { %254 = vmatprep.subr.bf16.mxu0 %v341_v0  ;;  %p315_p4 = scmp.lt.s32.totalorder %s313_s25, %s309_s2 }
  0x2d   :  { %p316_p5 = por %p315_p4, %p314_p3 }
  0x2e   :  { %256 = vmatpush3.bf16.msra.mxu0 %v255_v7 }
  0x2f   :  { %p317_p6 = pnand %p316_p5, %p310_p2 }
  0x31   :  { %244 = vmatmul.mubr.msk.f32.vlgmr.msra.gmra.mrb[0].mxu0 %vm60_vm1, %v48_v8 }
 0x104   :  { %v130_v10 = vpop.f32.mrb[0].mxu0 }
 0x105   :  { %v131_v11 = vadd.f32 %v226_v9, %v130_v10  ;;  %v245_v12 = vpop.f32.mrb[1].mxu0 }
 0x107   :  { %v134_v13 = vmax.f32 %v131_v11, 0.0 }
 0x109   :  { %247 = vmatpush3.xpose.msra.mxu1 %v134_v13 }
 0x10c   :  { %249 = vmatmul.mubr.f32.vlgmr.msra.gmra.mrb[0].mxu1 %v135_v14 }
 0x1df   :  { %v204_v16 = vpop.f32.mrb[0].mxu1 }
 0x1e0   :  { %v205_v17 = vadd.f32 %v204_v16, %v137_v15  ;;  %v250_v18 = vpop.f32.mrb[1].mxu1 }
 0x1e2   :  { %209 = vst.msk [vmem:[#allocation8] sm:$0x1] %vm208_vm2, %v205_v17 }
 0x1e3   :  { %320 = shalt.err (!%p317_p6)
}
 0x1e4   :  { %s321_s4 = scalar_lea.hbm %s432_s5, 16 }
 0x1e5   :  { %p322_p7 = scmp.ne.s32.totalorder %s432_s5, %s321_s4  ;;  %p325_p8 = scmp.lt.u32.totalorder %s321_s4, %s432_s5 }
 0x1e7   :  { %p327_p9 = pnand %p325_p8, %p322_p7 }
 0x1e9   :  { %330 = shalt.err (!%p327_p9)
}
 0x1ea   :  { %219 = dma.vmem_to_hbm [thread:$0]  %s217_s24, 16, %s432_s5, [#allocation5]  }
 0x1eb   :  { %335 = dma.done.wait [#allocation5], 16  }
 0x1ec   :  { %336 = vsyncadd [#allocation5], 4294967280 }
 0x1ed   :  { %223 = vsyncpa [#allocation4], 1 }
 0x1ee   :  { %224 = vsyncpa [#allocation7], 1 }
 0x1ef   :  { %225 = vsyncpa [#allocation5], 1 }

</bundles_post_ra>
